<compile_context>
chip_gen: v7x
topology: tpu7x:2x2x1
jax: 0.10.0
libtpu: 0.0.40
codegen_flags: <defaults>
</compile_context>

<pallas_src>
import jax
import jax.numpy as jnp
from jax.experimental import pallas as pl
from jax.experimental.pallas import tpu as pltpu

_GELU_C = 0.7978845608028654  # sqrt(2 / pi)


def _tanh_gelu(h):
    # 0.5 * h * (1 + tanh(sqrt(2/pi) * (h + 0.044715 * h^3))), factored so only
    # one extra (rows, hid) temporary is live besides h (less vreg pressure).
    return 0.5 * h * (1.0 + jnp.tanh(_GELU_C * (h * (1.0 + 0.044715 * (h * h)))))


# --------------------------------------------------------------------------
# Kernel 1: weights fully resident in VMEM, 1-D grid over row tiles.
# --------------------------------------------------------------------------
def _ffn_kernel_resident(x_ref, w1_ref, b1_ref, w2_ref, b2_ref, o_ref):
    # x: (tm, d_in); w1: (d_in, d_hid); b1: (1, d_hid); w2: (d_hid, d_in);
    # b2: (1, d_in); o: (tm, d_in)
    h = jnp.dot(x_ref[...], w1_ref[...], preferred_element_type=jnp.float32)
    h = h + b1_ref[...]                      # f32 bias add on f32 accumulator
    g = _tanh_gelu(h)
    out = jnp.dot(g.astype(w2_ref.dtype), w2_ref[...],
                  preferred_element_type=jnp.float32)
    o_ref[...] = (out + b2_ref[...]).astype(o_ref.dtype)


# --------------------------------------------------------------------------
# Kernel 2: hidden dim streamed in chunks, 2-D grid (rows "parallel",
# hidden chunks "arbitrary"), f32 output accumulator in VMEM scratch.
# --------------------------------------------------------------------------
def _ffn_kernel_hidden_tiled(x_ref, w1_ref, b1_ref, w2_ref, b2_ref, o_ref,
                             acc_ref):
    k = pl.program_id(1)

    @pl.when(k == 0)
    def _():
        acc_ref[...] = jnp.zeros_like(acc_ref)

    h = jnp.dot(x_ref[...], w1_ref[...], preferred_element_type=jnp.float32)
    h = h + b1_ref[...]
    g = _tanh_gelu(h)
    acc_ref[...] += jnp.dot(g.astype(w2_ref.dtype), w2_ref[...],
                            preferred_element_type=jnp.float32)

    @pl.when(k == pl.num_programs(1) - 1)
    def _():
        o_ref[...] = (acc_ref[...] + b2_ref[...]).astype(o_ref.dtype)


def _round_up(n, m):
    return ((n + m - 1) // m) * m


def _min_sublane(dtype):
    # Native sublane packing: f32 -> 8, bf16 -> 16, int8/fp8 -> 32.
    return {4: 8, 2: 16, 1: 32}.get(jnp.dtype(dtype).itemsize, 8)


def feed_forward(x, w1, b1, w2, b2, *, tm=None, d_hid_tile=None,
                 compute_dtype=jnp.bfloat16,
                 vmem_budget_bytes=40 * 1024 * 1024):
    """FeedForward forward pass: GELU_tanh(x @ w1 + b1) @ w2 + b2.

    x: (B, T, d_in); w1: (d_in, d_hid); b1: (d_hid,); w2: (d_hid, d_in);
    b2: (d_in,).  Weights are stored (in, out) (pre-transposed vs nn.Linear).
    """
    B, T, d_in = x.shape
    d_hid = w1.shape[1]
    assert w1.shape == (d_in, d_hid)
    assert b1.shape == (d_hid,)
    assert w2.shape == (d_hid, d_in)
    assert b2.shape == (d_in,)

    out_dtype = x.dtype
    M = B * T

    # bf16 on the MXU with f32 accumulation; biases stay f32.
    if compute_dtype is not None:
        x = x.astype(compute_dtype)
        w1 = w1.astype(compute_dtype)
        w2 = w2.astype(compute_dtype)
    b1_2d = b1.reshape(1, d_hid).astype(jnp.float32)
    b2_2d = b2.reshape(1, d_in).astype(jnp.float32)

    xf = x.reshape(M, d_in)                      # free reshape; no pad, no slice
    in_size = xf.dtype.itemsize
    out_size = jnp.dtype(out_dtype).itemsize

    # Row tile: 256-aligned for real shapes (MXU-native width on v6e/v7x);
    # toy shapes shrink so the "parallel" row axis still has >= 2 steps where
    # possible (keeps both v7x TensorCores busy).
    sub = _min_sublane(xf.dtype)
    if tm is None:
        if M >= 512:
            tm = 256
        else:
            tm = _round_up(pl.cdiv(M, 2), sub)
    tm = max(sub, min(_round_up(tm, sub), _round_up(M, sub)))
    n_row_tiles = pl.cdiv(M, tm)                 # ragged last tile is fine

    # Estimated VMEM working set of the all-weights-resident design.
    resident_bytes = (
        2 * d_in * d_hid * in_size               # w1 + w2 (single-buffered)
        + (d_hid + d_in) * 4                     # biases (f32)
        + 2 * tm * d_in * in_size                # x tile, double-buffered
        + 2 * tm * d_in * out_size               # out tile, double-buffered
        + 3 * tm * d_hid * 4                     # h / GELU live f32 temporaries
    )

    if d_hid_tile is None:
        if resident_bytes <= vmem_budget_bytes:
            d_hid_tile = d_hid                   # keep both weights resident
        else:
            d_hid_tile = 128                     # stream the hidden dim
            for cand in (512, 256, 128):
                if d_hid % cand == 0:
                    d_hid_tile = cand
                    break
    use_tiled = d_hid_tile != d_hid
    if use_tiled:
        assert d_hid % d_hid_tile == 0 and d_hid_tile % 128 == 0, (
            "hidden tile must be a 128-multiple divisor of d_hid")

    if use_tiled:
        working_set = (
            2 * 2 * d_in * d_hid_tile * in_size  # w1/w2 tiles, double-buffered
            + 2 * (d_hid_tile + d_in) * 4        # bias tiles
            + 2 * tm * d_in * (in_size + out_size)
            + tm * d_in * 4                      # f32 accumulator scratch
            + 3 * tm * d_hid_tile * 4            # GELU live temporaries
        )
    else:
        working_set = resident_bytes
    vmem_limit = int(min(max(2 * working_set, 16 * 1024 * 1024),
                         48 * 1024 * 1024))

    cost = pl.CostEstimate(
        flops=int(4 * M * d_in * d_hid),
        transcendentals=int(M * d_hid),
        bytes_accessed=int(M * d_in * (in_size + out_size)
                           + 2 * d_in * d_hid * in_size
                           + (d_hid + d_in) * 4),
    )

    def _call(weight_pipeline_mode):
        wkw = ({} if weight_pipeline_mode is None
               else dict(pipeline_mode=weight_pipeline_mode))
        if not use_tiled:
            grid = (n_row_tiles,)
            in_specs = [
                pl.BlockSpec((tm, d_in), lambda i: (i, 0)),            # x rows
                pl.BlockSpec((d_in, d_hid), lambda i: (0, 0), **wkw),  # w1
                pl.BlockSpec((1, d_hid), lambda i: (0, 0), **wkw),     # b1
                pl.BlockSpec((d_hid, d_in), lambda i: (0, 0), **wkw),  # w2
                pl.BlockSpec((1, d_in), lambda i: (0, 0), **wkw),      # b2
            ]
            out_specs = pl.BlockSpec((tm, d_in), lambda i: (i, 0))
            scratch_shapes = []
            kernel = _ffn_kernel_resident
            dims = ("parallel",)
        else:
            grid = (n_row_tiles, d_hid // d_hid_tile)
            in_specs = [
                pl.BlockSpec((tm, d_in), lambda i, k: (i, 0)),          # x rows
                pl.BlockSpec((d_in, d_hid_tile), lambda i, k: (0, k)),  # w1 tile
                pl.BlockSpec((1, d_hid_tile), lambda i, k: (0, k)),     # b1 tile
                pl.BlockSpec((d_hid_tile, d_in), lambda i, k: (k, 0)),  # w2 tile
                pl.BlockSpec((1, d_in), lambda i, k: (0, 0), **wkw),    # b2
            ]
            out_specs = pl.BlockSpec((tm, d_in), lambda i, k: (i, 0))
            scratch_shapes = [pltpu.VMEM((tm, d_in), jnp.float32)]
            kernel = _ffn_kernel_hidden_tiled
            dims = ("parallel", "arbitrary")

        return pl.pallas_call(
            kernel,
            out_shape=jax.ShapeDtypeStruct((M, d_in), out_dtype),
            grid_spec=pltpu.PrefetchScalarGridSpec(
                num_scalar_prefetch=0,
                grid=grid,
                in_specs=in_specs,
                out_specs=out_specs,
                scratch_shapes=scratch_shapes,
            ),
            compiler_params=pltpu.CompilerParams(
                dimension_semantics=dims,
                vmem_limit_bytes=vmem_limit,
            ),
            cost_estimate=cost,
        )(xf, w1, b1_2d, w2, b2_2d)

    try:
        # Single-buffer the grid-invariant weight/bias operands: they are
        # fetched once anyway, so the second pipeline buffer is pure VMEM tax.
        out_flat = _call(pl.Buffered(1))
    except Exception:
        # Fallback: default double-buffering (still correct, just more VMEM).
        out_flat = _call(None)

    return out_flat.reshape(B, T, d_in)


def reference_ffn(x, w1, b1, w2, b2, compute_dtype=None):
    """Plain-JAX reference mirroring the PyTorch forward.

    With compute_dtype set, it mimics the kernel's bf16-input / f32-accumulate
    precision so the comparison is apples-to-apples.
    """
    out_dtype = x.dtype
    if compute_dtype is not None:
        x = x.astype(compute_dtype)
        w1 = w1.astype(compute_dtype)
        w2 = w2.astype(compute_dtype)
    h = jnp.dot(x, w1, preferred_element_type=jnp.float32) + b1.astype(jnp.float32)
    g = 0.5 * h * (1.0 + jnp.tanh(_GELU_C * (h + 0.044715 * h ** 3)))
    out = (jnp.dot(g.astype(w2.dtype), w2, preferred_element_type=jnp.float32)
           + b2.astype(jnp.float32))
    return out.astype(out_dtype)


if __name__ == "__main__":
    key = jax.random.PRNGKey(0)

    def make_params(k, emb_dim):
        d_hid = 4 * emb_dim
        k1, kb1, k2, kb2 = jax.random.split(k, 4)
        w1 = jax.random.normal(k1, (emb_dim, d_hid), jnp.float32) * 0.1
        b1 = jax.random.normal(kb1, (d_hid,), jnp.float32) * 0.1
        w2 = jax.random.normal(k2, (d_hid, emb_dim), jnp.float32) * 0.1
        b2 = jax.random.normal(kb2, (emb_dim,), jnp.float32) * 0.1
        return w1, b1, w2, b2

    # Test 1: weights-resident path (emb_dim=32 -> d_hid=128); M=48 rows gives
    # two row tiles with a ragged last tile (exercises masked writeback).
    B, T, emb_dim = 2, 24, 32
    kx, kp, key = jax.random.split(key, 3)
    x = jax.random.normal(kx, (B, T, emb_dim), dtype=jnp.float32)
    w1, b1, w2, b2 = make_params(kp, emb_dim)

    out = jax.block_until_ready(feed_forward(x, w1, b1, w2, b2))
    ref_matched = reference_ffn(x, w1, b1, w2, b2, compute_dtype=jnp.bfloat16)
    ref_f32 = reference_ffn(x, w1, b1, w2, b2)
    assert out.shape == ref_f32.shape and out.dtype == x.dtype
    assert jnp.allclose(out, ref_matched, atol=1e-2, rtol=1e-2), \
        "resident path mismatch vs matched-precision reference"
    assert jnp.allclose(out, ref_f32, atol=1e-1, rtol=1e-1), \
        "resident path far from f32 reference"

    # Test 2: hidden-dim-tiled path (forced), accumulating over 2 hidden
    # chunks of 128 (emb_dim=64 -> d_hid=256).
    B2, T2, emb_dim2 = 2, 8, 64
    kx2, kp2, key = jax.random.split(key, 3)
    x2 = jax.random.normal(kx2, (B2, T2, emb_dim2), dtype=jnp.float32)
    p2 = make_params(kp2, emb_dim2)
    out2 = jax.block_until_ready(feed_forward(x2, *p2, d_hid_tile=128))
    ref2 = reference_ffn(x2, *p2, compute_dtype=jnp.bfloat16)
    assert jnp.allclose(out2, ref2, atol=1e-2, rtol=1e-2), \
        "hidden-tiled path mismatch vs matched-precision reference"

    print("KERNEL_OK")
</pallas_src>

<mosaic_0001>
module attributes {stable_mosaic.version = 11 : i64} {
  func.func @_ffn_kernel_resident(%arg0: i32, %arg1: memref<32x32xbf16, #tpu.memory_space<vmem>>, %arg2: memref<32x128xbf16, #tpu.memory_space<vmem>>, %arg3: memref<1x128xf32, #tpu.memory_space<vmem>>, %arg4: memref<128x32xbf16, #tpu.memory_space<vmem>>, %arg5: memref<1x32xf32, #tpu.memory_space<vmem>>, %arg6: memref<32x32xf32, #tpu.memory_space<vmem>>) attributes {dimension_semantics = [#tpu.dimension_semantics<parallel>], iteration_bounds = array<i64: 2>, scalar_prefetch = 0 : i64, scratch_operands = 0 : i64, tpu.core_type = #tpu.core_type<tc>, window_params = [{transform_indices = @transform_0, window_bounds = array<i64: 32, 32>}, {pipeline_mode = #tpu.pipeline_mode<synchronous>, transform_indices = @transform_1, window_bounds = array<i64: 32, 128>}, {pipeline_mode = #tpu.pipeline_mode<synchronous>, transform_indices = @transform_2, window_bounds = array<i64: 1, 128>}, {pipeline_mode = #tpu.pipeline_mode<synchronous>, transform_indices = @transform_3, window_bounds = array<i64: 128, 32>}, {pipeline_mode = #tpu.pipeline_mode<synchronous>, transform_indices = @transform_4, window_bounds = array<i64: 1, 32>}, {transform_indices = @transform_5, window_bounds = array<i64: 32, 32>}]} {
    %c0 = arith.constant 0 : index
    %c0_0 = arith.constant 0 : index
    %0 = vector.load %arg1[%c0, %c0_0] : memref<32x32xbf16, #tpu.memory_space<vmem>>, vector<32x32xbf16>
    %c0_1 = arith.constant 0 : index
    %c0_2 = arith.constant 0 : index
    %1 = vector.load %arg2[%c0_1, %c0_2] : memref<32x128xbf16, #tpu.memory_space<vmem>>, vector<32x128xbf16>
    %cst = arith.constant dense<0.000000e+00> : vector<32x128xf32>
    %2 = tpu.matmul %0, %1, %cst {dimension_numbers = #tpu.dot_dimension_numbers<[1], [0], [0], [1], [0, 0, 1, 1], [], []>} : vector<32x32xbf16>, vector<32x128xbf16>, vector<32x128xf32> -> vector<32x128xf32>
    %c0_3 = arith.constant 0 : index
    %c0_4 = arith.constant 0 : index
    %3 = vector.load %arg3[%c0_3, %c0_4] : memref<1x128xf32, #tpu.memory_space<vmem>>, vector<1x128xf32>
    %4 = vector.broadcast %3 : vector<1x128xf32> to vector<32x128xf32>
    %5 = arith.addf %2, %4 : vector<32x128xf32>
    %cst_5 = arith.constant 5.000000e-01 : f32
    %6 = vector.broadcast %cst_5 : f32 to vector<32x128xf32>
    %7 = arith.mulf %6, %5 : vector<32x128xf32>
    %8 = arith.mulf %5, %5 : vector<32x128xf32>
    %cst_6 = arith.constant 4.471500e-02 : f32
    %9 = vector.broadcast %cst_6 : f32 to vector<32x128xf32>
    %10 = arith.mulf %9, %8 : vector<32x128xf32>
    %cst_7 = arith.constant 1.000000e+00 : f32
    %11 = vector.broadcast %cst_7 : f32 to vector<32x128xf32>
    %12 = arith.addf %11, %10 : vector<32x128xf32>
    %13 = arith.mulf %5, %12 : vector<32x128xf32>
    %cst_8 = arith.constant 0.797884583 : f32
    %14 = vector.broadcast %cst_8 : f32 to vector<32x128xf32>
    %15 = arith.mulf %14, %13 : vector<32x128xf32>
    %16 = math.tanh %15 : vector<32x128xf32>
    %cst_9 = arith.constant 1.000000e+00 : f32
    %17 = vector.broadcast %cst_9 : f32 to vector<32x128xf32>
    %18 = arith.addf %17, %16 : vector<32x128xf32>
    %19 = arith.mulf %7, %18 : vector<32x128xf32>
    %20 = arith.truncf %19 : vector<32x128xf32> to vector<32x128xbf16>
    %c0_10 = arith.constant 0 : index
    %c0_11 = arith.constant 0 : index
    %21 = vector.load %arg4[%c0_10, %c0_11] : memref<128x32xbf16, #tpu.memory_space<vmem>>, vector<128x32xbf16>
    %cst_12 = arith.constant dense<0.000000e+00> : vector<32x32xf32>
    %22 = tpu.matmul %20, %21, %cst_12 {dimension_numbers = #tpu.dot_dimension_numbers<[1], [0], [0], [1], [0, 0, 1, 1], [], []>} : vector<32x128xbf16>, vector<128x32xbf16>, vector<32x32xf32> -> vector<32x32xf32>
    %c0_13 = arith.constant 0 : index
    %c0_14 = arith.constant 0 : index
    %23 = vector.load %arg5[%c0_13, %c0_14] : memref<1x32xf32, #tpu.memory_space<vmem>>, vector<1x32xf32>
    %24 = vector.broadcast %23 : vector<1x32xf32> to vector<32x32xf32>
    %25 = arith.addf %22, %24 : vector<32x32xf32>
    %c0_15 = arith.constant 0 : index
    %c0_16 = arith.constant 0 : index
    %26 = vector.load %arg6[%c0_15, %c0_16] : memref<32x32xf32, #tpu.memory_space<vmem>>, vector<32x32xf32>
    tpu.vector_store %arg6[%c0_15, %c0_16], %25 {strides = array<i32>} : memref<32x32xf32, #tpu.memory_space<vmem>>, vector<32x32xf32>,
    return
  }
  func.func @transform_0(%arg0: i32) -> (i32, i32) {
    %c0_i32 = arith.constant 0 : i32
    %c0_i32_0 = arith.constant 0 : i32
    return %arg0, %c0_i32 : i32, i32
  }
  func.func @transform_1(%arg0: i32) -> (i32, i32) {
    %c0_i32 = arith.constant 0 : i32
    %c0_i32_0 = arith.constant 0 : i32
    %c0_i32_1 = arith.constant 0 : i32
    return %c0_i32, %c0_i32_0 : i32, i32
  }
  func.func @transform_2(%arg0: i32) -> (i32, i32) {
    %c0_i32 = arith.constant 0 : i32
    %c0_i32_0 = arith.constant 0 : i32
    %c0_i32_1 = arith.constant 0 : i32
    return %c0_i32, %c0_i32_0 : i32, i32
  }
  func.func @transform_3(%arg0: i32) -> (i32, i32) {
    %c0_i32 = arith.constant 0 : i32
    %c0_i32_0 = arith.constant 0 : i32
    %c0_i32_1 = arith.constant 0 : i32
    return %c0_i32, %c0_i32_0 : i32, i32
  }
  func.func @transform_4(%arg0: i32) -> (i32, i32) {
    %c0_i32 = arith.constant 0 : i32
    %c0_i32_0 = arith.constant 0 : i32
    %c0_i32_1 = arith.constant 0 : i32
    return %c0_i32, %c0_i32_0 : i32, i32
  }
  func.func @transform_5(%arg0: i32) -> (i32, i32) {
    %c0_i32 = arith.constant 0 : i32
    %c0_i32_0 = arith.constant 0 : i32
    return %arg0, %c0_i32 : i32, i32
  }
}

module attributes {stable_mosaic.version = 11 : i64} {
  func.func @_ffn_kernel_resident(%arg0: i32, %arg1: memref<32x32xbf16, #tpu.memory_space<vmem>>, %arg2: memref<32x128xbf16, #tpu.memory_space<vmem>>, %arg3: memref<1x128xf32, #tpu.memory_space<vmem>>, %arg4: memref<128x32xbf16, #tpu.memory_space<vmem>>, %arg5: memref<1x32xf32, #tpu.memory_space<vmem>>, %arg6: memref<32x32xf32, #tpu.memory_space<vmem>>) attributes {dimension_semantics = [#tpu.dimension_semantics<parallel>], iteration_bounds = array<i64: 2>, scalar_prefetch = 0 : i64, scratch_operands = 0 : i64, tpu.core_type = #tpu.core_type<tc>, window_params = [{transform_indices = @transform_0, window_bounds = array<i64: 32, 32>}, {pipeline_mode = #tpu.pipeline_mode<synchronous>, transform_indices = @transform_1, window_bounds = array<i64: 32, 128>}, {pipeline_mode = #tpu.pipeline_mode<synchronous>, transform_indices = @transform_2, window_bounds = array<i64: 1, 128>}, {pipeline_mode = #tpu.pipeline_mode<synchronous>, transform_indices = @transform_3, window_bounds = array<i64: 128, 32>}, {pipeline_mode = #tpu.pipeline_mode<synchronous>, transform_indices = @transform_4, window_bounds = array<i64: 1, 32>}, {transform_indices = @transform_5, window_bounds = array<i64: 32, 32>}]} {
    %c0 = arith.constant 0 : index
    %c0_0 = arith.constant 0 : index
    %0 = vector.load %arg1[%c0, %c0_0] : memref<32x32xbf16, #tpu.memory_space<vmem>>, vector<32x32xbf16>
    %c0_1 = arith.constant 0 : index
    %c0_2 = arith.constant 0 : index
    %1 = vector.load %arg2[%c0_1, %c0_2] : memref<32x128xbf16, #tpu.memory_space<vmem>>, vector<32x128xbf16>
    %cst = arith.constant dense<0.000000e+00> : vector<32x128xf32>
    %2 = tpu.matmul %0, %1, %cst {dimension_numbers = #tpu.dot_dimension_numbers<[1], [0], [0], [1], [0, 0, 1, 1], [], []>} : vector<32x32xbf16>, vector<32x128xbf16>, vector<32x128xf32> -> vector<32x128xf32>
    %c0_3 = arith.constant 0 : index
    %c0_4 = arith.constant 0 : index
    %3 = vector.load %arg3[%c0_3, %c0_4] : memref<1x128xf32, #tpu.memory_space<vmem>>, vector<1x128xf32>
    %4 = vector.broadcast %3 : vector<1x128xf32> to vector<32x128xf32>
    %5 = arith.addf %2, %4 : vector<32x128xf32>
    %cst_5 = arith.constant 5.000000e-01 : f32
    %6 = vector.broadcast %cst_5 : f32 to vector<32x128xf32>
    %7 = arith.mulf %6, %5 : vector<32x128xf32>
    %8 = arith.mulf %5, %5 : vector<32x128xf32>
    %cst_6 = arith.constant 4.471500e-02 : f32
    %9 = vector.broadcast %cst_6 : f32 to vector<32x128xf32>
    %10 = arith.mulf %9, %8 : vector<32x128xf32>
    %cst_7 = arith.constant 1.000000e+00 : f32
    %11 = vector.broadcast %cst_7 : f32 to vector<32x128xf32>
    %12 = arith.addf %11, %10 : vector<32x128xf32>
    %13 = arith.mulf %5, %12 : vector<32x128xf32>
    %cst_8 = arith.constant 0.797884583 : f32
    %14 = vector.broadcast %cst_8 : f32 to vector<32x128xf32>
    %15 = arith.mulf %14, %13 : vector<32x128xf32>
    %16 = math.tanh %15 : vector<32x128xf32>
    %cst_9 = arith.constant 1.000000e+00 : f32
    %17 = vector.broadcast %cst_9 : f32 to vector<32x128xf32>
    %18 = arith.addf %17, %16 : vector<32x128xf32>
    %19 = arith.mulf %7, %18 : vector<32x128xf32>
    %20 = arith.truncf %19 : vector<32x128xf32> to vector<32x128xbf16>
    %c0_10 = arith.constant 0 : index
    %c0_11 = arith.constant 0 : index
    %21 = vector.load %arg4[%c0_10, %c0_11] : memref<128x32xbf16, #tpu.memory_space<vmem>>, vector<128x32xbf16>
    %cst_12 = arith.constant dense<0.000000e+00> : vector<32x32xf32>
    %22 = tpu.matmul %20, %21, %cst_12 {dimension_numbers = #tpu.dot_dimension_numbers<[1], [0], [0], [1], [0, 0, 1, 1], [], []>} : vector<32x128xbf16>, vector<128x32xbf16>, vector<32x32xf32> -> vector<32x32xf32>
    %c0_13 = arith.constant 0 : index
    %c0_14 = arith.constant 0 : index
    %23 = vector.load %arg5[%c0_13, %c0_14] : memref<1x32xf32, #tpu.memory_space<vmem>>, vector<1x32xf32>
    %24 = vector.broadcast %23 : vector<1x32xf32> to vector<32x32xf32>
    %25 = arith.addf %22, %24 : vector<32x32xf32>
    %c0_15 = arith.constant 0 : index
    %c0_16 = arith.constant 0 : index
    %26 = vector.load %arg6[%c0_15, %c0_16] : memref<32x32xf32, #tpu.memory_space<vmem>>, vector<32x32xf32>
    tpu.vector_store %arg6[%c0_15, %c0_16], %25 {strides = array<i32>} : memref<32x32xf32, #tpu.memory_space<vmem>>, vector<32x32xf32>,
    return
  }
  func.func @transform_0(%arg0: i32) -> (i32, i32) {
    %c0_i32 = arith.constant 0 : i32
    %c0_i32_0 = arith.constant 0 : i32
    return %arg0, %c0_i32 : i32, i32
  }
  func.func @transform_1(%arg0: i32) -> (i32, i32) {
    %c0_i32 = arith.constant 0 : i32
    %c0_i32_0 = arith.constant 0 : i32
    %c0_i32_1 = arith.constant 0 : i32
    return %c0_i32, %c0_i32_0 : i32, i32
  }
  func.func @transform_2(%arg0: i32) -> (i32, i32) {
    %c0_i32 = arith.constant 0 : i32
    %c0_i32_0 = arith.constant 0 : i32
    %c0_i32_1 = arith.constant 0 : i32
    return %c0_i32, %c0_i32_0 : i32, i32
  }
  func.func @transform_3(%arg0: i32) -> (i32, i32) {
    %c0_i32 = arith.constant 0 : i32
    %c0_i32_0 = arith.constant 0 : i32
    %c0_i32_1 = arith.constant 0 : i32
    return %c0_i32, %c0_i32_0 : i32, i32
  }
  func.func @transform_4(%arg0: i32) -> (i32, i32) {
    %c0_i32 = arith.constant 0 : i32
    %c0_i32_0 = arith.constant 0 : i32
    %c0_i32_1 = arith.constant 0 : i32
    return %c0_i32, %c0_i32_0 : i32, i32
  }
  func.func @transform_5(%arg0: i32) -> (i32, i32) {
    %c0_i32 = arith.constant 0 : i32
    %c0_i32_0 = arith.constant 0 : i32
    return %arg0, %c0_i32 : i32, i32
  }
}

</mosaic_0001>

<bundles_post_ra>
// kernel: tpu_custom_call.1
= control target key start
LH: loop header
LB: loop body
LE: loop exit
PB: predicated region body
PF: predicated region fallthrough
CT: control target
= control target key end

     0   :  { %s1040_s18 = smov 0   ;;  %s1042_s19 = smov 0   ;;  %s1182_s0 = inlined_call_operand.vmem [shape: bf16[48,32], index: 0, kind: input, shape index: {}]   ;;  %s1183_s1 = inlined_call_operand.vmem [shape: bf16[32,128], index: 1, kind: input, shape index: {}]   ;;  %s1184_s2 = inlined_call_operand.vmem [shape: f32[1,128], index: 2, kind: input, shape index: {}]   ;;  %s1185_s3 = inlined_call_operand.vmem [shape: bf16[128,32], index: 3, kind: input, shape index: {}]   ;;  %s1186_s4 = inlined_call_operand.vmem [shape: f32[1,32], index: 4, kind: input, shape index: {}]   ;;  %s1187_s5 = inlined_call_operand.vmem [shape: f32[48,32], index: 5, kind: output, shape index: {}]  }
   0x1   :  { %s1044_s20 = smov 0  }
   0x2 LB: > { %s1053_s21 = sadd.s32 4294967295, %s976_s20   ;;  %s1055_s22 = sadd.s32 1, %s976_s20   ;;  %s976_s20 = sphi %s1044_s20, %s1194_s20   ;;  %s972_s19 = sphi %s1042_s19, %s1193_s19   ;;  %s968_s18 = sphi %s1040_s18, %s1192_s18  }
   0x3   : > { %s129_s23 = ssub.s32 %s976_s20, %s1055_s22  ;;  %s132_s24 = sadd.s32 1, %s972_s19 }
   0x4   : > { %p130_p0 = scmp.eq.s32.totalorder %s129_s23, 0  ;;  %p142_p1 = scmp.ne.s32.totalorder %s972_s19, %s968_s18 }
   0x5   : > { %p143_p2 = scmp.eq.s32.totalorder %s1053_s21, 1  ;;  %p732_p3 = scmp.ge.s32.totalorder %s976_s20, 1 }
   0x6   : > { %s1063_s25 = scalar_select %p130_p0, %s972_s19, %s132_s24  }
   0x7   : > { %p1065_p4 = por %p143_p2, %p142_p1  ;;  %p196_p5 = scmp.lt.s32.totalorder %s976_s20, 3 }
   0x9   : > { %p197_p6 = pnand %p732_p3, %p196_p5 }
   0xa   : > { %v902_v0 = vld [vmem:[%s1183_s1] sm:$0xff] (!%p197_p6)   ;;  %s1073_s29 = sshll.u32 (!%p197_p6), %s1053_s21, 2  ;;  %v903_v1 = vld [vmem:[%s1183_s1 + $0x8] sm:$0xff] (!%p197_p6)   ;;  %vm284_vm0 = vcmask (!%p197_p6), 261120   ;;  %v908_v6 = vld [vmem:[%s1185_s3 + $0x10] sm:$0xff] (!%p197_p6)   ;;  %s224_s12 = sand.u32 (!%p197_p6), 1, %s968_s18  }
   0xb   : > { %200 = sbr.rel (%p197_p6) target bundleno = 536 (0x218), region = 40  ;;  %p232_p7 = scmp.lt.s32.totalorder (!%p197_p6), %s1073_s29, 5  ;;  %786 = vmatprep.subr.bf16.mxu0 (!%p197_p6), %v902_v0  ;;  %v906_v4 = vld [vmem:[%s1185_s3] sm:$0xff] (!%p197_p6)   ;;  %v907_v5 = vld [vmem:[%s1185_s3 + $0x8] sm:$0xff] (!%p197_p6)   ;;  %v909_v7 = vld [vmem:[%s1185_s3 + $0x18] sm:$0xff] (!%p197_p6)  }
   0xc   : > { %787 = vmatpush3.bf16.msra.mxu0 (!%p197_p6), %v902_v0  ;;  %794 = vmatprep.subr.bf16.mxu1 (!%p197_p6), %v906_v4  ;;  %v910_v8 = vld [vmem:[%s1185_s3 + $0x20] sm:$0xff] (!%p197_p6)   ;;  %v911_v9 = vld [vmem:[%s1185_s3 + $0x28] sm:$0xff] (!%p197_p6)   ;;  %v912_v10 = vld [vmem:[%s1185_s3 + $0x30] sm:$0xff] (!%p197_p6)   ;;  %s733_s13 = sshll.u32 (!%p197_p6), %s224_s12, 5 }
   0xd   : > { %788 = vmatprep.subr.bf16.mxu0 (!%p197_p6), %v903_v1  ;;  %795 = vmatpush3.bf16.msra.mxu1 (!%p197_p6), %v906_v4  ;;  %v913_v11 = vld [vmem:[%s1185_s3 + $0x38] sm:$0xff] (!%p197_p6)   ;;  %v736_v12 = vld [vmem:[%s1184_s2] ss:$0 sm:$0xff] (!%p197_p6)  ;;  %s1116_s16 = scalar_lea.vmem (!%p197_p6), [#allocation2], %s733_s13  }
   0xe   : > { %796 = vmatprep.subr.bf16.mxu1 (!%p197_p6), %v907_v5  ;;  %v743_v59 = vld [vmem:[%s1186_s4] ss:$0 sm:$0xff] (!%p197_p6) }
  0x10   : > { %789 = vmatpush3.bf16.msra.mxu0 (!%p197_p6), %v903_v1 }
  0x11   : > { %797 = vmatpush3.bf16.msra.mxu1 (!%p197_p6), %v907_v5 }
  0x12   : > { %s233_s7 = scalar_select %p232_p7, %s1073_s29, 5  ;;  %798 = vmatprep.subr.bf16.mxu1 %v908_v6 }
  0x13   : > { %s510_s18 = ssub.s32 (%p1065_p4), 6, %s1073_s29  ;;  %s769_s17 = sshll.u32 (%p1065_p4), %s1053_s21, 5 }
  0x14   : > { %s735_s8 = sshll.u32 %s233_s7, 2  ;;  %p511_p8 = scmp.lt.s32.totalorder (%p1065_p4), %s510_s18, 4 }
  0x15   : > { %s235_s11 = scalar_lea.vmem %s1182_s0, %s735_s8  ;;  %799 = vmatpush3.bf16.msra.mxu1 %v908_v6  ;;  %s1133_s24 = scalar_lea.vmem (%p1065_p4), %s1187_s5, %s769_s17  }
  0x16   : > { %v904_v2 = vld [vmem:[%s235_s11] sm:$0xff]   ;;  %v905_v3 = vld [vmem:[%s235_s11 + $0x8] sm:$0xff]   ;;  %800 = vmatprep.subr.bf16.mxu1 %v909_v7 }
  0x17   : > { %790 = vmatprep.mubr.msk.bf16.mxu0 %vm284_vm0, %v904_v2 }
  0x18   : > { %791 = vmatmul.mubr.msk.bf16.vlgmr.msra.gmra.mrb[0].mxu0 %vm284_vm0, %v905_v3 }
  0x19   : > { %801 = vmatpush3.bf16.msra.mxu1 %v909_v7 }
  0x1a   : > { %802 = vmatprep.subr.bf16.mxu1 %v910_v8 }
  0x1d   : > { %803 = vmatpush3.bf16.msra.mxu1 %v910_v8 }
  0x1e   : > { %804 = vmatprep.subr.bf16.mxu1 %v911_v9 }
  0x21   : > { %805 = vmatpush3.bf16.msra.mxu1 %v911_v9 }
  0x22   : > { %806 = vmatprep.subr.bf16.mxu1 %v912_v10 }
  0x25   : > { %807 = vmatpush3.bf16.msra.mxu1 %v912_v10 }
  0x26   : > { %808 = vmatprep.subr.bf16.mxu1 %v913_v11 }
  0x29   : > { %809 = vmatpush3.bf16.msra.mxu1 %v913_v11 }
  0xeb   : > { %v792_v13 = vpop.f32.mrb[0].mxu0 }
  0xec   : > { %v334_v14 = vadd.f32 %v792_v13, %v736_v12  ;;  %v325_v15 = vpop.f32.mrb[1].mxu0 }
  0xed   : > { %v326_v16 = vadd.f32 %v736_v12, %v325_v15  ;;  %v793_v17 = vpop.f32.mrb[2].mxu0 }
  0xee   : > { %v346_v18 = vmul.f32 %v334_v14, %v334_v14  ;;  %v337_v19 = vadd.f32 %v793_v17, %v736_v12  ;;  %v328_v20 = vpop.f32.mrb[3].mxu0  ;;  %v342_v47 = vmul.f32 0.5, %v334_v14 }
  0xef   : > { %v344_v21 = vmul.f32 %v326_v16, %v326_v16  ;;  %v329_v22 = vadd.f32 %v736_v12, %v328_v20  ;;  %v340_v50 = vmul.f32 0.5, %v326_v16 }
  0xf0   : > { %v350_v23 = vmul.f32 0.044715, %v346_v18  ;;  %v347_v24 = vmul.f32 %v337_v19, %v337_v19  ;;  %v343_v48 = vmul.f32 0.5, %v337_v19 }
  0xf1   : > { %v348_v25 = vmul.f32 0.044715, %v344_v21  ;;  %v345_v26 = vmul.f32 %v329_v22, %v329_v22  ;;  %v341_v51 = vmul.f32 0.5, %v329_v22 }
  0xf2   : > { %v354_v27 = vadd.f32 1.0, %v350_v23  ;;  %v351_v28 = vmul.f32 0.044715, %v347_v24 }
  0xf3   : > { %v352_v29 = vadd.f32 1.0, %v348_v25  ;;  %v349_v30 = vmul.f32 0.044715, %v345_v26 }
  0xf4   : > { %v358_v31 = vmul.f32 %v354_v27, %v334_v14  ;;  %v355_v32 = vadd.f32 1.0, %v351_v28 }
  0xf5   : > { %v356_v33 = vmul.f32 %v352_v29, %v326_v16  ;;  %v353_v34 = vadd.f32 1.0, %v349_v30 }
  0xf6   : > { %v362_v35 = vmul.f32 0.7978846, %v358_v31  ;;  %v359_v36 = vmul.f32 %v355_v32, %v337_v19 }
  0xf7   : > { %v360_v37 = vmul.f32 0.7978846, %v356_v33  ;;  %v357_v38 = vmul.f32 %v353_v34, %v329_v22 }
  0xf8   : > { %914 = vtanh.f32 %v362_v35  ;;  %v363_v39 = vmul.f32 0.7978846, %v359_v36 }
  0xf9   : > { %916 = vtanh.f32 %v360_v37  ;;  %v361_v40 = vmul.f32 0.7978846, %v357_v38 }
  0xfa   : > { %918 = vtanh.f32 %v363_v39 }
  0xfb   : > { %920 = vtanh.f32 %v361_v40 }
 0x102   : > { %v915_v41 = vpop.eup %914 }
 0x103   : > { %v917_v42 = vpop.eup %916  ;;  %v370_v43 = vadd.f32 1.0, %v915_v41 }
 0x104   : > { %v919_v44 = vpop.eup %918  ;;  %v368_v45 = vadd.f32 1.0, %v917_v42 }
 0x105   : > { %v921_v46 = vpop.eup %920  ;;  %v371_v49 = vadd.f32 1.0, %v919_v44  ;;  %v374_v53 = vmul.f32 %v370_v43, %v342_v47 }
 0x106   : > { %v369_v52 = vadd.f32 1.0, %v921_v46  ;;  %v372_v55 = vmul.f32 %v368_v45, %v340_v50 }
 0x107   : > { %v375_v54 = vmul.f32 %v371_v49, %v343_v48 }
 0x108   : > { %v373_v56 = vmul.f32 %v369_v52, %v341_v51 }
 0x109   : > { %v377_v57 = vpack.c.bf16 %v375_v54, %v374_v53 }
 0x10a   : > { %v376_v58 = vpack.c.bf16 %v373_v56, %v372_v55 }
 0x10c   : > { %810 = vmatprep.mubr.bf16.mxu1 %v376_v58 }
 0x10d   : > { %811 = vmatmul.mubr.bf16.vlgmr.msra.gmra.mrb[0].mxu1 %v377_v57 }
 0x1e0   : > { %v812_v60 = vpop.f32.mrb[0].mxu1  ;;  %508 = sbr.rel (!%p1065_p4) target bundleno = 536 (0x218), region = 44 }
 0x1e1   : > { %v492_v61 = vadd.f32 %v812_v60, %v743_v59  ;;  %v483_v62 = vpop.f32.mrb[1].mxu1 }
 0x1e2   : > { %v484_v63 = vadd.f32 %v743_v59, %v483_v62  ;;  %v813_v0 = vpop.f32.mrb[2].mxu1 }
 0x1e3   : > { %500 = vst.msk [vmem:[%s1116_s16 + $0x10] sm:$0xff] %vm284_vm0, %v492_v61  ;;  %v495_v1 = vadd.f32 %v813_v0, %v743_v59  ;;  %v486_v2 = vpop.f32.mrb[3].mxu1 }
 0x1e4   : > { %498 = vst.msk [vmem:[%s1116_s16] sm:$0xff] %vm284_vm0, %v484_v63  ;;  %v487_v3 = vadd.f32 %v743_v59, %v486_v2 }
 0x1e5   : > { %501 = vst.msk [vmem:[%s1116_s16 + $0x18] sm:$0xff] %vm284_vm0, %v495_v1 }
 0x1e6   : > { %499 = vst.msk [vmem:[%s1116_s16 + $0x8] sm:$0xff] %vm284_vm0, %v487_v3 }
 0x1e7   : > { %s1196_s18 = smov (!%p511_p8, %s510_s18), 4 }
 0x1e8   : > { %s754_s27 = sshll.u32 %s1196_s18, 7 }
 0x1e9   : > { %p757_p9 = scmp.eq.s32.totalorder %s754_s27, 0 }
 0x1ea   : > { %s1139_s28 = sshrl.u32 (!%p757_p9), %s1196_s18, 2 }
 0x1eb   : > { %519 = sbr.rel (%p757_p9) target bundleno = 536 (0x218), region = 48  ;;  %p758_p10 = scmp.le.s32.totalorder (!%p757_p9), %s1139_s28, 0 }
 0x1f2   : > { %685 = sbr.rel (%p758_p10) target bundleno = 515 (0x203), region = 124  ;;  %s1189_s21 = smov (!%p758_p10), %s1133_s24 }
 0x1f3   : > { %s1190_s26 = smov (!%p758_p10), %s1116_s16  ;;  %s1148_s29 = smov (!%p758_p10), 0  }
 0x1f4   : > { %s990_s30 = smov (!%p758_p10), 0  }
 0x1f9 LB: >> { %v587_v4 = vld [vmem:[%s984_s26] sm:$0xff]  ;;  %v589_v5 = vld [vmem:[%s984_s26 + $0x8] sm:$0xff]  ;;  %v591_v6 = vld [vmem:[%s984_s26 + $0x10] sm:$0xff]  ;;  %s595_s6 = sadd.s32 1, %s988_s29  ;;  %s581_s30 = sadd.s32 1, %s992_s30   ;;  %s992_s30 = sphi %s990_s30, %s581_s30   ;;  %s988_s29 = sphi %s1148_s29, %s1191_s29   ;;  %s984_s26 = sphi %s1190_s26, %s600_s26   ;;  %s980_s21 = sphi %s1189_s21, %s601_s21  }
 0x1fa   : >> { %588 = vst [vmem:[%s980_s21] sm:$0xff] %v587_v4  ;;  %590 = vst [vmem:[%s980_s21 + $0x8] sm:$0xff] %v589_v5  ;;  %v593_v7 = vld [vmem:[%s984_s26 + $0x18] sm:$0xff]  ;;  %p596_p11 = scmp.ge.s32.totalorder %s595_s6, %s1139_s28  ;;  %p580_p12 = scmp.ge.s32.totalorder %s581_s30, %s1139_s28 }
 0x1fb   : >> { %592 = vst [vmem:[%s980_s21 + $0x10] sm:$0xff] %v591_v6  ;;  %594 = vst [vmem:[%s980_s21 + $0x18] sm:$0xff] %v593_v7 }
 0x1fc   : >> { %s1198_s6 = smov (%p596_p11, %s595_s6), 0  ;;  %583 = sbr.rel (!%p580_p12) target bundleno = 505 (0x1f9), region = 130 }
 0x1fd   : >> { %s759_s7 = sshll.u32 %s1198_s6, 5  ;;  %s1191_s29 = smov %s1198_s6 }
 0x1fe   : >> { %s600_s26 = scalar_lea.vmem %s1116_s16, %s759_s7 [#allocation2]   ;;  %s601_s21 = scalar_lea.vmem %s1133_s24, %s759_s7  }
 0x203 PF: > { %s1164_s8 = sand.u32 3, %s1196_s18   ;;  %s770_s9 = sshll.u32 %s1139_s28, 5 }
 0x204   : > { %s606_s10 = scalar_lea.vmem %s1116_s16, %s770_s9 [#allocation2]   ;;  %s608_s11 = scalar_lea.vmem %s1133_s24, %s770_s9  }
 0x205   : > { %p764_p13 = scmp.le.s32.totalorder %s1164_s8, 0 }
 0x206   : > { %s994_s12 = smov (!%p764_p13), %s608_s11   ;;  %s998_s13 = smov (!%p764_p13), %s606_s10  }
 0x207   : > { %699 = sbr.rel (%p764_p13) target bundleno = 536 (0x218), region = 135  ;;  %s1002_s14 = smov (!%p764_p13), 0  }
 0x208   : > { %s1006_s15 = smov (!%p764_p13), 0  }
 0x20e LB: >> { %v618_v8 = vld [vmem:[%s1000_s13] sm:$0xff]  ;;  %s620_s18 = sadd.s32 1, %s1004_s14  ;;  %s612_s15 = sadd.s32 1, %s1008_s15   ;;  %s1008_s15 = sphi %s1006_s15, %s612_s15   ;;  %s1004_s14 = sphi %s1002_s14, %s1003_s14   ;;  %s1000_s13 = sphi %s998_s13, %s625_s13   ;;  %s996_s12 = sphi %s994_s12, %s626_s12  }
 0x20f   : >> { %619 = vst [vmem:[%s996_s12] sm:$0xff] %v618_v8  ;;  %p621_p0 = scmp.ge.s32.totalorder %s620_s18, %s1164_s8  ;;  %p611_p1 = scmp.ge.s32.totalorder %s612_s15, %s1164_s8 }
 0x211   : >> { %s1200_s18 = smov (%p621_p0, %s620_s18), 0  ;;  %614 = sbr.rel (!%p611_p1) target bundleno = 526 (0x20e), region = 141 }
 0x212   : >> { %s765_s16 = sshll.u32 %s1200_s18, 3  ;;  %s1003_s14 = smov %s1200_s18  }
 0x213   : >> { %s625_s13 = scalar_lea.vmem %s606_s10, %s765_s16 [#allocation2]   ;;  %s626_s12 = scalar_lea.vmem %s608_s11, %s765_s16  }
 0x218 PF: > { %p12_p2 = scmp.ge.s32.totalorder %s1055_s22, 4   ;;  %s1192_s18 = smov %s972_s19 }
 0x219   : > { %s1193_s19 = smov %s1063_s25  ;;  %s1194_s20 = smov %s1055_s22 }
 0x21a   :  { %14 = sbr.rel (!%p12_p2) target bundleno = 2 (0x2), region = 152 }

// kernel: tpu_custom_call.1
= control target key start
LH: loop header
LB: loop body
LE: loop exit
PB: predicated region body
PF: predicated region fallthrough
CT: control target
= control target key end

     0   :  { %s1040_s18 = smov 0   ;;  %s1042_s19 = smov 0   ;;  %s1182_s0 = inlined_call_operand.vmem [shape: bf16[48,32], index: 0, kind: input, shape index: {}]   ;;  %s1183_s1 = inlined_call_operand.vmem [shape: bf16[32,128], index: 1, kind: input, shape index: {}]   ;;  %s1184_s2 = inlined_call_operand.vmem [shape: f32[1,128], index: 2, kind: input, shape index: {}]   ;;  %s1185_s3 = inlined_call_operand.vmem [shape: bf16[128,32], index: 3, kind: input, shape index: {}]   ;;  %s1186_s4 = inlined_call_operand.vmem [shape: f32[1,32], index: 4, kind: input, shape index: {}]   ;;  %s1187_s5 = inlined_call_operand.vmem [shape: f32[48,32], index: 5, kind: output, shape index: {}]  }
   0x1   :  { %s1044_s20 = smov 0  }
   0x2 LB: > { %s1053_s21 = sadd.s32 4294967295, %s976_s20   ;;  %s1055_s22 = sadd.s32 1, %s976_s20   ;;  %s976_s20 = sphi %s1044_s20, %s1194_s20   ;;  %s972_s19 = sphi %s1042_s19, %s1193_s19   ;;  %s968_s18 = sphi %s1040_s18, %s1192_s18  }
   0x3   : > { %s129_s23 = ssub.s32 %s976_s20, %s1055_s22  ;;  %s132_s24 = sadd.s32 1, %s972_s19 }
   0x4   : > { %p130_p0 = scmp.eq.s32.totalorder %s129_s23, 0  ;;  %p142_p1 = scmp.ne.s32.totalorder %s972_s19, %s968_s18 }
   0x5   : > { %p143_p2 = scmp.eq.s32.totalorder %s1053_s21, 1  ;;  %p732_p3 = scmp.ge.s32.totalorder %s976_s20, 1 }
   0x6   : > { %s1063_s25 = scalar_select %p130_p0, %s972_s19, %s132_s24  }
   0x7   : > { %p1065_p4 = por %p143_p2, %p142_p1  ;;  %p196_p5 = scmp.lt.s32.totalorder %s976_s20, 3 }
   0x9   : > { %p197_p6 = pnand %p732_p3, %p196_p5 }
   0xa   : > { %v902_v0 = vld [vmem:[%s1183_s1] sm:$0xff] (!%p197_p6)   ;;  %s1073_s29 = sshll.u32 (!%p197_p6), %s1053_s21, 2  ;;  %v903_v1 = vld [vmem:[%s1183_s1 + $0x8] sm:$0xff] (!%p197_p6)   ;;  %vm284_vm0 = vcmask (!%p197_p6), 261120   ;;  %v908_v6 = vld [vmem:[%s1185_s3 + $0x10] sm:$0xff] (!%p197_p6)   ;;  %s224_s12 = sand.u32 (!%p197_p6), 1, %s968_s18  }
   0xb   : > { %200 = sbr.rel (%p197_p6) target bundleno = 536 (0x218), region = 40  ;;  %p232_p7 = scmp.lt.s32.totalorder (!%p197_p6), %s1073_s29, 5  ;;  %786 = vmatprep.subr.bf16.mxu0 (!%p197_p6), %v902_v0  ;;  %v906_v4 = vld [vmem:[%s1185_s3] sm:$0xff] (!%p197_p6)   ;;  %v907_v5 = vld [vmem:[%s1185_s3 + $0x8] sm:$0xff] (!%p197_p6)   ;;  %v909_v7 = vld [vmem:[%s1185_s3 + $0x18] sm:$0xff] (!%p197_p6)  }
   0xc   : > { %787 = vmatpush3.bf16.msra.mxu0 (!%p197_p6), %v902_v0  ;;  %794 = vmatprep.subr.bf16.mxu1 (!%p197_p6), %v906_v4  ;;  %v910_v8 = vld [vmem:[%s1185_s3 + $0x20] sm:$0xff] (!%p197_p6)   ;;  %v911_v9 = vld [vmem:[%s1185_s3 + $0x28] sm:$0xff] (!%p197_p6)   ;;  %v912_v10 = vld [vmem:[%s1185_s3 + $0x30] sm:$0xff] (!%p197_p6)   ;;  %s733_s13 = sshll.u32 (!%p197_p6), %s224_s12, 5 }
   0xd   : > { %788 = vmatprep.subr.bf16.mxu0 (!%p197_p6), %v903_v1  ;;  %795 = vmatpush3.bf16.msra.mxu1 (!%p197_p6), %v906_v4  ;;  %v913_v11 = vld [vmem:[%s1185_s3 + $0x38] sm:$0xff] (!%p197_p6)   ;;  %v736_v12 = vld [vmem:[%s1184_s2] ss:$0 sm:$0xff] (!%p197_p6)  ;;  %s1116_s16 = scalar_lea.vmem (!%p197_p6), [#allocation2], %s733_s13  }
   0xe   : > { %796 = vmatprep.subr.bf16.mxu1 (!%p197_p6), %v907_v5  ;;  %v743_v59 = vld [vmem:[%s1186_s4] ss:$0 sm:$0xff] (!%p197_p6) }
  0x10   : > { %789 = vmatpush3.bf16.msra.mxu0 (!%p197_p6), %v903_v1 }
  0x11   : > { %797 = vmatpush3.bf16.msra.mxu1 (!%p197_p6), %v907_v5 }
  0x12   : > { %s233_s7 = scalar_select %p232_p7, %s1073_s29, 5  ;;  %798 = vmatprep.subr.bf16.mxu1 %v908_v6 }
  0x13   : > { %s510_s18 = ssub.s32 (%p1065_p4), 6, %s1073_s29  ;;  %s769_s17 = sshll.u32 (%p1065_p4), %s1053_s21, 5 }
  0x14   : > { %s735_s8 = sshll.u32 %s233_s7, 2  ;;  %p511_p8 = scmp.lt.s32.totalorder (%p1065_p4), %s510_s18, 4 }
  0x15   : > { %s235_s11 = scalar_lea.vmem %s1182_s0, %s735_s8  ;;  %799 = vmatpush3.bf16.msra.mxu1 %v908_v6  ;;  %s1133_s24 = scalar_lea.vmem (%p1065_p4), %s1187_s5, %s769_s17  }
  0x16   : > { %v904_v2 = vld [vmem:[%s235_s11] sm:$0xff]   ;;  %v905_v3 = vld [vmem:[%s235_s11 + $0x8] sm:$0xff]   ;;  %800 = vmatprep.subr.bf16.mxu1 %v909_v7 }
  0x17   : > { %790 = vmatprep.mubr.msk.bf16.mxu0 %vm284_vm0, %v904_v2 }
  0x18   : > { %791 = vmatmul.mubr.msk.bf16.vlgmr.msra.gmra.mrb[0].mxu0 %vm284_vm0, %v905_v3 }
  0x19   : > { %801 = vmatpush3.bf16.msra.mxu1 %v909_v7 }
  0x1a   : > { %802 = vmatprep.subr.bf16.mxu1 %v910_v8 }
  0x1d   : > { %803 = vmatpush3.bf16.msra.mxu1 %v910_v8 }
  0x1e   : > { %804 = vmatprep.subr.bf16.mxu1 %v911_v9 }
  0x21   : > { %805 = vmatpush3.bf16.msra.mxu1 %v911_v9 }
  0x22   : > { %806 = vmatprep.subr.bf16.mxu1 %v912_v10 }
  0x25   : > { %807 = vmatpush3.bf16.msra.mxu1 %v912_v10 }
  0x26   : > { %808 = vmatprep.subr.bf16.mxu1 %v913_v11 }
  0x29   : > { %809 = vmatpush3.bf16.msra.mxu1 %v913_v11 }
  0xeb   : > { %v792_v13 = vpop.f32.mrb[0].mxu0 }
  0xec   : > { %v334_v14 = vadd.f32 %v792_v13, %v736_v12  ;;  %v325_v15 = vpop.f32.mrb[1].mxu0 }
  0xed   : > { %v326_v16 = vadd.f32 %v736_v12, %v325_v15  ;;  %v793_v17 = vpop.f32.mrb[2].mxu0 }
  0xee   : > { %v346_v18 = vmul.f32 %v334_v14, %v334_v14  ;;  %v337_v19 = vadd.f32 %v793_v17, %v736_v12  ;;  %v328_v20 = vpop.f32.mrb[3].mxu0  ;;  %v342_v47 = vmul.f32 0.5, %v334_v14 }
  0xef   : > { %v344_v21 = vmul.f32 %v326_v16, %v326_v16  ;;  %v329_v22 = vadd.f32 %v736_v12, %v328_v20  ;;  %v340_v50 = vmul.f32 0.5, %v326_v16 }
  0xf0   : > { %v350_v23 = vmul.f32 0.044715, %v346_v18  ;;  %v347_v24 = vmul.f32 %v337_v19, %v337_v19  ;;  %v343_v48 = vmul.f32 0.5, %v337_v19 }
  0xf1   : > { %v348_v25 = vmul.f32 0.044715, %v344_v21  ;;  %v345_v26 = vmul.f32 %v329_v22, %v329_v22  ;;  %v341_v51 = vmul.f32 0.5, %v329_v22 }
  0xf2   : > { %v354_v27 = vadd.f32 1.0, %v350_v23  ;;  %v351_v28 = vmul.f32 0.044715, %v347_v24 }
  0xf3   : > { %v352_v29 = vadd.f32 1.0, %v348_v25  ;;  %v349_v30 = vmul.f32 0.044715, %v345_v26 }
  0xf4   : > { %v358_v31 = vmul.f32 %v354_v27, %v334_v14  ;;  %v355_v32 = vadd.f32 1.0, %v351_v28 }
  0xf5   : > { %v356_v33 = vmul.f32 %v352_v29, %v326_v16  ;;  %v353_v34 = vadd.f32 1.0, %v349_v30 }
  0xf6   : > { %v362_v35 = vmul.f32 0.7978846, %v358_v31  ;;  %v359_v36 = vmul.f32 %v355_v32, %v337_v19 }
  0xf7   : > { %v360_v37 = vmul.f32 0.7978846, %v356_v33  ;;  %v357_v38 = vmul.f32 %v353_v34, %v329_v22 }
  0xf8   : > { %914 = vtanh.f32 %v362_v35  ;;  %v363_v39 = vmul.f32 0.7978846, %v359_v36 }
  0xf9   : > { %916 = vtanh.f32 %v360_v37  ;;  %v361_v40 = vmul.f32 0.7978846, %v357_v38 }
  0xfa   : > { %918 = vtanh.f32 %v363_v39 }
  0xfb   : > { %920 = vtanh.f32 %v361_v40 }
 0x102   : > { %v915_v41 = vpop.eup %914 }
 0x103   : > { %v917_v42 = vpop.eup %916  ;;  %v370_v43 = vadd.f32 1.0, %v915_v41 }
 0x104   : > { %v919_v44 = vpop.eup %918  ;;  %v368_v45 = vadd.f32 1.0, %v917_v42 }
 0x105   : > { %v921_v46 = vpop.eup %920  ;;  %v371_v49 = vadd.f32 1.0, %v919_v44  ;;  %v374_v53 = vmul.f32 %v370_v43, %v342_v47 }
 0x106   : > { %v369_v52 = vadd.f32 1.0, %v921_v46  ;;  %v372_v55 = vmul.f32 %v368_v45, %v340_v50 }
 0x107   : > { %v375_v54 = vmul.f32 %v371_v49, %v343_v48 }
 0x108   : > { %v373_v56 = vmul.f32 %v369_v52, %v341_v51 }
 0x109   : > { %v377_v57 = vpack.c.bf16 %v375_v54, %v374_v53 }
 0x10a   : > { %v376_v58 = vpack.c.bf16 %v373_v56, %v372_v55 }
 0x10c   : > { %810 = vmatprep.mubr.bf16.mxu1 %v376_v58 }
 0x10d   : > { %811 = vmatmul.mubr.bf16.vlgmr.msra.gmra.mrb[0].mxu1 %v377_v57 }
 0x1e0   : > { %v812_v60 = vpop.f32.mrb[0].mxu1  ;;  %508 = sbr.rel (!%p1065_p4) target bundleno = 536 (0x218), region = 44 }
 0x1e1   : > { %v492_v61 = vadd.f32 %v812_v60, %v743_v59  ;;  %v483_v62 = vpop.f32.mrb[1].mxu1 }
 0x1e2   : > { %v484_v63 = vadd.f32 %v743_v59, %v483_v62  ;;  %v813_v0 = vpop.f32.mrb[2].mxu1 }
 0x1e3   : > { %500 = vst.msk [vmem:[%s1116_s16 + $0x10] sm:$0xff] %vm284_vm0, %v492_v61  ;;  %v495_v1 = vadd.f32 %v813_v0, %v743_v59  ;;  %v486_v2 = vpop.f32.mrb[3].mxu1 }
 0x1e4   : > { %498 = vst.msk [vmem:[%s1116_s16] sm:$0xff] %vm284_vm0, %v484_v63  ;;  %v487_v3 = vadd.f32 %v743_v59, %v486_v2 }
 0x1e5   : > { %501 = vst.msk [vmem:[%s1116_s16 + $0x18] sm:$0xff] %vm284_vm0, %v495_v1 }
 0x1e6   : > { %499 = vst.msk [vmem:[%s1116_s16 + $0x8] sm:$0xff] %vm284_vm0, %v487_v3 }
 0x1e7   : > { %s1196_s18 = smov (!%p511_p8, %s510_s18), 4 }
 0x1e8   : > { %s754_s27 = sshll.u32 %s1196_s18, 7 }
 0x1e9   : > { %p757_p9 = scmp.eq.s32.totalorder %s754_s27, 0 }
 0x1ea   : > { %s1139_s28 = sshrl.u32 (!%p757_p9), %s1196_s18, 2 }
 0x1eb   : > { %519 = sbr.rel (%p757_p9) target bundleno = 536 (0x218), region = 48  ;;  %p758_p10 = scmp.le.s32.totalorder (!%p757_p9), %s1139_s28, 0 }
 0x1f2   : > { %685 = sbr.rel (%p758_p10) target bundleno = 515 (0x203), region = 124  ;;  %s1189_s21 = smov (!%p758_p10), %s1133_s24 }
 0x1f3   : > { %s1190_s26 = smov (!%p758_p10), %s1116_s16  ;;  %s1148_s29 = smov (!%p758_p10), 0  }
 0x1f4   : > { %s990_s30 = smov (!%p758_p10), 0  }
 0x1f9 LB: >> { %v587_v4 = vld [vmem:[%s984_s26] sm:$0xff]  ;;  %v589_v5 = vld [vmem:[%s984_s26 + $0x8] sm:$0xff]  ;;  %v591_v6 = vld [vmem:[%s984_s26 + $0x10] sm:$0xff]  ;;  %s595_s6 = sadd.s32 1, %s988_s29  ;;  %s581_s30 = sadd.s32 1, %s992_s30   ;;  %s992_s30 = sphi %s990_s30, %s581_s30   ;;  %s988_s29 = sphi %s1148_s29, %s1191_s29   ;;  %s984_s26 = sphi %s1190_s26, %s600_s26   ;;  %s980_s21 = sphi %s1189_s21, %s601_s21  }
 0x1fa   : >> { %588 = vst [vmem:[%s980_s21] sm:$0xff] %v587_v4  ;;  %590 = vst [vmem:[%s980_s21 + $0x8] sm:$0xff] %v589_v5  ;;  %v593_v7 = vld [vmem:[%s984_s26 + $0x18] sm:$0xff]  ;;  %p596_p11 = scmp.ge.s32.totalorder %s595_s6, %s1139_s28  ;;  %p580_p12 = scmp.ge.s32.totalorder %s581_s30, %s1139_s28 }
 0x1fb   : >> { %592 = vst [vmem:[%s980_s21 + $0x10] sm:$0xff] %v591_v6  ;;  %594 = vst [vmem:[%s980_s21 + $0x18] sm:$0xff] %v593_v7 }
 0x1fc   : >> { %s1198_s6 = smov (%p596_p11, %s595_s6), 0  ;;  %583 = sbr.rel (!%p580_p12) target bundleno = 505 (0x1f9), region = 130 }
 0x1fd   : >> { %s759_s7 = sshll.u32 %s1198_s6, 5  ;;  %s1191_s29 = smov %s1198_s6 }
 0x1fe   : >> { %s600_s26 = scalar_lea.vmem %s1116_s16, %s759_s7 [#allocation2]   ;;  %s601_s21 = scalar_lea.vmem %s1133_s24, %s759_s7  }
 0x203 PF: > { %s1164_s8 = sand.u32 3, %s1196_s18   ;;  %s770_s9 = sshll.u32 %s1139_s28, 5 }
 0x204   : > { %s606_s10 = scalar_lea.vmem %s1116_s16, %s770_s9 [#allocation2]   ;;  %s608_s11 = scalar_lea.vmem %s1133_s24, %s770_s9  }
 0x205   : > { %p764_p13 = scmp.le.s32.totalorder %s1164_s8, 0 }
 0x206   : > { %s994_s12 = smov (!%p764_p13), %s608_s11   ;;  %s998_s13 = smov (!%p764_p13), %s606_s10  }
 0x207   : > { %699 = sbr.rel (%p764_p13) target bundleno = 536 (0x218), region = 135  ;;  %s1002_s14 = smov (!%p764_p13), 0  }
 0x208   : > { %s1006_s15 = smov (!%p764_p13), 0  }
 0x20e LB: >> { %v618_v8 = vld [vmem:[%s1000_s13] sm:$0xff]  ;;  %s620_s18 = sadd.s32 1, %s1004_s14  ;;  %s612_s15 = sadd.s32 1, %s1008_s15   ;;  %s1008_s15 = sphi %s1006_s15, %s612_s15   ;;  %s1004_s14 = sphi %s1002_s14, %s1003_s14   ;;  %s1000_s13 = sphi %s998_s13, %s625_s13   ;;  %s996_s12 = sphi %s994_s12, %s626_s12  }
 0x20f   : >> { %619 = vst [vmem:[%s996_s12] sm:$0xff] %v618_v8  ;;  %p621_p0 = scmp.ge.s32.totalorder %s620_s18, %s1164_s8  ;;  %p611_p1 = scmp.ge.s32.totalorder %s612_s15, %s1164_s8 }
 0x211   : >> { %s1200_s18 = smov (%p621_p0, %s620_s18), 0  ;;  %614 = sbr.rel (!%p611_p1) target bundleno = 526 (0x20e), region = 141 }
 0x212   : >> { %s765_s16 = sshll.u32 %s1200_s18, 3  ;;  %s1003_s14 = smov %s1200_s18  }
 0x213   : >> { %s625_s13 = scalar_lea.vmem %s606_s10, %s765_s16 [#allocation2]   ;;  %s626_s12 = scalar_lea.vmem %s608_s11, %s765_s16  }
 0x218 PF: > { %p12_p2 = scmp.ge.s32.totalorder %s1055_s22, 4   ;;  %s1192_s18 = smov %s972_s19 }
 0x219   : > { %s1193_s19 = smov %s1063_s25  ;;  %s1194_s20 = smov %s1055_s22 }
 0x21a   :  { %14 = sbr.rel (!%p12_p2) target bundleno = 2 (0x2), region = 152 }

</bundles_post_ra>
